<compile_context>
chip_gen: v6e
topology: v6e:2x2x1
jax: 0.10.0
libtpu: 0.0.40
codegen_flags: <defaults>
</compile_context>

<pallas_src>
import math

import jax
import jax.numpy as jnp
from jax.experimental import pallas as pl
from jax.experimental.pallas import tpu as pltpu


def _round_up(x, m):
    return ((x + m - 1) // m) * m


def _pad2d(a, rows, cols):
    pr, pc = rows - a.shape[0], cols - a.shape[1]
    if pr == 0 and pc == 0:
        return a
    return jnp.pad(a, ((0, pr), (0, pc)))


def _tpu_generation():
    try:
        kind = jax.devices()[0].device_kind.lower()
    except Exception:
        return 0
    for g in (7, 6, 5, 4, 3, 2):
        if f"v{g}" in kind:
            return g
    return 0


def _vmem_capacity_bytes():
    try:
        return int(pltpu.get_tpu_info().vmem_capacity_bytes)
    except Exception:
        # Conservative default (v7x per-TC capacity); safe on every generation.
        return 64 * 1024 * 1024


def _mlp_kernel(x_ref, w1_ref, b1_ref, w2_ref, b2_ref, o_ref, acc_ref):
    # x_ref: (tm, in_p); w1_ref: (in_p, th); b1_ref: (1, th)
    # w2_ref: (th, out_p); b2_ref: (1, out_p); o_ref: (tm, out_p)
    # acc_ref: (tm, out_p) f32 scratch, accumulates over the hidden grid axis.
    k = pl.program_id(1)

    @pl.when(k == 0)
    def _():
        acc_ref[...] = jnp.zeros_like(acc_ref)

    # fc1 slab -- feed the MXU in the weight dtype (fast bf16 mode when weights
    # are bf16); accumulate in f32 via preferred_element_type.
    x = x_ref[...]
    if x.dtype != w1_ref.dtype:
        x = x.astype(w1_ref.dtype)
    h = jnp.dot(x, w1_ref[...], preferred_element_type=jnp.float32)
    h = h + b1_ref[...].astype(jnp.float32)

    # exact GELU (nn.GELU default): 0.5 * x * (1 + erf(x / sqrt(2)))
    # TODO(synk): a tanh-approx GELU would move this off the VALU slot (EUP) on
    # v6e/v7x, but exact erf is kept to match torch nn.GELU() semantics.
    h = 0.5 * h * (1.0 + jax.lax.erf(h * (1.0 / math.sqrt(2.0))))

    # drop1: p = 0.0 -> identity (module default). Dropout with p > 0 would need
    # pltpu.prng_seed / prng_random_bits.

    # fc2 slab -- accumulate this hidden slab's contribution.
    acc_ref[...] += jnp.dot(h.astype(w2_ref.dtype), w2_ref[...],
                            preferred_element_type=jnp.float32)

    @pl.when(k == pl.num_programs(1) - 1)
    def _():
        # drop2: p = 0.0 -> identity
        o_ref[...] = (acc_ref[...] + b2_ref[...].astype(jnp.float32)).astype(o_ref.dtype)


def mlp_pallas(x, w1, b1, w2, b2, *, tm=512, th=512):
    """x: (M, in_f); w1: (in_f, hid); b1: (hid,); w2: (hid, out_f); b2: (out_f,)."""
    M, in_f = x.shape
    hid = w1.shape[1]
    out_f = w2.shape[1]
    assert w1.shape[0] == in_f and w2.shape[0] == hid
    assert b1.shape == (hid,) and b2.shape == (out_f,)
    out_dtype = x.dtype

    gen = _tpu_generation()
    vmem_cap = _vmem_capacity_bytes()

    x_item = jnp.dtype(x.dtype).itemsize
    w_item = jnp.dtype(w1.dtype).itemsize
    o_item = jnp.dtype(out_dtype).itemsize

    # --- feature padding (zero padding is numerically exact for this MLP) ---
    # Contraction dims (in, hid) align to the MXU width: 256 on v6e/v7x for
    # dims > 128, else 128.  Output features align to the 128 lane width.
    def k_align(d):
        return 256 if (gen >= 6 and d > 128) else 128

    in_p = _round_up(in_f, k_align(in_f))
    out_p = _round_up(out_f, 128)

    hid_align = k_align(hid)
    th_eff = _round_up(max(int(th), hid_align), hid_align)
    hid_min = _round_up(hid, hid_align)
    if hid_min <= th_eff:
        th_eff = hid_min
        hid_p = hid_min
    else:
        hid_p = _round_up(hid, th_eff)

    # --- token tile ---
    m8 = _round_up(M, 8)
    tm_eff = _round_up(max(int(tm), 8), 8)
    tm_eff = min(tm_eff, m8)
    # v7x: two TensorCores share the "parallel" M axis -> ensure >= 2 steps.
    if gen >= 7 and m8 >= 16 and _round_up(m8, tm_eff) // tm_eff < 2:
        tm_eff = max(8, _round_up(pl.cdiv(m8, 2), 8))
    # Limit padding waste from the last (nearly empty) tile to ~25%.
    while tm_eff > 64 and (_round_up(m8, tm_eff) - m8) * 4 > _round_up(m8, tm_eff):
        tm_eff = max(8, _round_up(tm_eff // 2, 8))

    # --- VMEM working-set estimate & adaptive shrink ---
    def working_set(tm_, th_):
        return (2 * tm_ * in_p * x_item          # double-buffered x tile
                + 2 * tm_ * out_p * o_item       # double-buffered out tile
                + 2 * in_p * th_ * w_item        # w1 slab (double-buffered)
                + 2 * th_ * out_p * w_item       # w2 slab (double-buffered)
                + 2 * (th_ + out_p) * w_item     # biases
                + tm_ * out_p * 4                # f32 accumulator scratch
                + tm_ * th_ * 4                  # f32 GELU intermediate
                + tm_ * th_ * w_item)            # cast copy fed to fc2

    budget = int(vmem_cap * 0.7)
    while working_set(tm_eff, th_eff) > budget:
        if tm_eff > 64:
            tm_eff = max(8, _round_up(tm_eff // 2, 8))
        elif th_eff > hid_align:
            th_eff //= 2  # still a multiple of hid_align and a divisor of hid_p
        else:
            break

    m_pad = _round_up(m8, tm_eff)
    grid_m = m_pad // tm_eff
    grid_k = hid_p // th_eff

    est = working_set(tm_eff, th_eff)
    vmem_limit = int(min(max(int(est * 1.5), 16 * 1024 * 1024),
                         int(vmem_cap * 0.75)))

    x_p = _pad2d(x, m_pad, in_p)
    w1_p = _pad2d(w1, in_p, hid_p)
    w2_p = _pad2d(w2, hid_p, out_p)
    b1_p = _pad2d(b1.reshape(1, hid), 1, hid_p)
    b2_p = _pad2d(b2.reshape(1, out_f), 1, out_p)

    out_pad = pl.pallas_call(
        _mlp_kernel,
        out_shape=jax.ShapeDtypeStruct((m_pad, out_p), out_dtype),
        grid_spec=pltpu.PrefetchScalarGridSpec(
            num_scalar_prefetch=0,
            grid=(grid_m, grid_k),
            in_specs=[
                pl.BlockSpec((tm_eff, in_p), lambda i, k: (i, 0)),    # x tile (reused across k)
                pl.BlockSpec((in_p, th_eff), lambda i, k: (0, k)),    # w1 slab (streamed)
                pl.BlockSpec((1, th_eff), lambda i, k: (0, k)),       # b1 slab
                pl.BlockSpec((th_eff, out_p), lambda i, k: (k, 0)),   # w2 slab (streamed)
                pl.BlockSpec((1, out_p), lambda i, k: (0, 0)),        # b2
            ],
            out_specs=pl.BlockSpec((tm_eff, out_p), lambda i, k: (i, 0)),
            scratch_shapes=[pltpu.VMEM((tm_eff, out_p), jnp.float32)],
        ),
        compiler_params=pltpu.CompilerParams(
            dimension_semantics=("parallel", "arbitrary"),
            vmem_limit_bytes=vmem_limit,
        ),
    )(x_p, w1_p, b1_p, w2_p, b2_p)

    return out_pad[:M, :out_f]


def mlp_reference(x, w1, b1, w2, b2):
    h = x @ w1 + b1
    h = 0.5 * h * (1.0 + jax.lax.erf(h / math.sqrt(2.0)))
    return h @ w2 + b2


if __name__ == "__main__":
    key = jax.random.PRNGKey(0)
    B, S = 2, 8
    in_features = 32
    hidden_features = 64
    out_features = 32

    k_x, k_w1, k_b1, k_w2, k_b2 = jax.random.split(key, 5)

    # Deterministic parameter init (uniform, roughly like torch's kaiming-uniform bound).
    bound1 = 1.0 / math.sqrt(in_features)
    bound2 = 1.0 / math.sqrt(hidden_features)
    w1 = jax.random.uniform(k_w1, (in_features, hidden_features),
                            minval=-bound1, maxval=bound1, dtype=jnp.float32)
    b1 = jax.random.uniform(k_b1, (hidden_features,),
                            minval=-bound1, maxval=bound1, dtype=jnp.float32)
    w2 = jax.random.uniform(k_w2, (hidden_features, out_features),
                            minval=-bound2, maxval=bound2, dtype=jnp.float32)
    b2 = jax.random.uniform(k_b2, (out_features,),
                            minval=-bound2, maxval=bound2, dtype=jnp.float32)

    x = jax.random.normal(k_x, (B, S, in_features), dtype=jnp.float32)
    x_flat = x.reshape(B * S, in_features)  # (tokens, features)

    out_flat = mlp_pallas(x_flat, w1, b1, w2, b2)
    out = out_flat.reshape(B, S, out_features)
    jax.block_until_ready(out)

    # Correctness check against pure-JAX reference.
    ref = mlp_reference(x_flat, w1, b1, w2, b2).reshape(B, S, out_features)
    assert jnp.allclose(out, ref, atol=1e-5, rtol=1e-5), "mismatch vs reference"

    print("KERNEL_OK")
</pallas_src>

<mosaic_0001>
module attributes {stable_mosaic.version = 11 : i64} {
  func.func @_mlp_kernel(%arg0: i32, %arg1: i32, %arg2: memref<16x128xf32, #tpu.memory_space<vmem>>, %arg3: memref<128x128xf32, #tpu.memory_space<vmem>>, %arg4: memref<1x128xf32, #tpu.memory_space<vmem>>, %arg5: memref<128x128xf32, #tpu.memory_space<vmem>>, %arg6: memref<1x128xf32, #tpu.memory_space<vmem>>, %arg7: memref<16x128xf32, #tpu.memory_space<vmem>>, %arg8: memref<16x128xf32, #tpu.memory_space<vmem>>) attributes {dimension_semantics = [#tpu.dimension_semantics<parallel>, #tpu.dimension_semantics<arbitrary>], iteration_bounds = array<i64: 1, 1>, scalar_prefetch = 0 : i64, scratch_operands = 1 : i64, tpu.core_type = #tpu.core_type<tc>, window_params = [{transform_indices = @transform_0, window_bounds = array<i64: 16, 128>}, {transform_indices = @transform_1, window_bounds = array<i64: 128, 128>}, {transform_indices = @transform_2, window_bounds = array<i64: 1, 128>}, {transform_indices = @transform_3, window_bounds = array<i64: 128, 128>}, {pipeline_mode = #tpu.pipeline_mode<synchronous>, transform_indices = @transform_4, window_bounds = array<i64: 1, 128>}, {transform_indices = @transform_5, window_bounds = array<i64: 16, 128>}]} {
    %c0_i32 = arith.constant 0 : i32
    %0 = arith.cmpi eq, %arg1, %c0_i32 : i32
    %1 = arith.extui %0 : i1 to i32
    %c0_i32_0 = arith.constant 0 : i32
    %2 = arith.cmpi ne, %1, %c0_i32_0 : i32
    scf.if %2 {
      %cst_18 = arith.constant 0.000000e+00 : f32
      %25 = vector.broadcast %cst_18 : f32 to vector<16x128xf32>
      %c0_19 = arith.constant 0 : index
      %c0_20 = arith.constant 0 : index
      %26 = vector.load %arg8[%c0_19, %c0_20] : memref<16x128xf32, #tpu.memory_space<vmem>>, vector<16x128xf32>
      tpu.vector_store %arg8[%c0_19, %c0_20], %25 {strides = array<i32>} : memref<16x128xf32, #tpu.memory_space<vmem>>, vector<16x128xf32>,
    } else {
    }
    %c0 = arith.constant 0 : index
    %c0_1 = arith.constant 0 : index
    %3 = vector.load %arg2[%c0, %c0_1] : memref<16x128xf32, #tpu.memory_space<vmem>>, vector<16x128xf32>
    %c0_2 = arith.constant 0 : index
    %c0_3 = arith.constant 0 : index
    %4 = vector.load %arg3[%c0_2, %c0_3] : memref<128x128xf32, #tpu.memory_space<vmem>>, vector<128x128xf32>
    %cst = arith.constant dense<0.000000e+00> : vector<16x128xf32>
    %5 = tpu.matmul %3, %4, %cst {dimension_numbers = #tpu.dot_dimension_numbers<[1], [0], [0], [1], [0, 0, 1, 1], [], []>} : vector<16x128xf32>, vector<128x128xf32>, vector<16x128xf32> -> vector<16x128xf32>
    %c0_4 = arith.constant 0 : index
    %c0_5 = arith.constant 0 : index
    %6 = vector.load %arg4[%c0_4, %c0_5] : memref<1x128xf32, #tpu.memory_space<vmem>>, vector<1x128xf32>
    %7 = vector.broadcast %6 : vector<1x128xf32> to vector<16x128xf32>
    %8 = arith.addf %5, %7 : vector<16x128xf32>
    %cst_6 = arith.constant 5.000000e-01 : f32
    %9 = vector.broadcast %cst_6 : f32 to vector<16x128xf32>
    %10 = arith.mulf %9, %8 : vector<16x128xf32>
    %cst_7 = arith.constant 0.707106769 : f32
    %11 = vector.broadcast %cst_7 : f32 to vector<16x128xf32>
    %12 = arith.mulf %8, %11 : vector<16x128xf32>
    %13 = math.erf %12 : vector<16x128xf32>
    %cst_8 = arith.constant 1.000000e+00 : f32
    %14 = vector.broadcast %cst_8 : f32 to vector<16x128xf32>
    %15 = arith.addf %14, %13 : vector<16x128xf32>
    %16 = arith.mulf %10, %15 : vector<16x128xf32>
    %c0_9 = arith.constant 0 : index
    %c0_10 = arith.constant 0 : index
    %17 = vector.load %arg8[%c0_9, %c0_10] : memref<16x128xf32, #tpu.memory_space<vmem>>, vector<16x128xf32>
    %c0_11 = arith.constant 0 : index
    %c0_12 = arith.constant 0 : index
    %18 = vector.load %arg5[%c0_11, %c0_12] : memref<128x128xf32, #tpu.memory_space<vmem>>, vector<128x128xf32>
    %cst_13 = arith.constant dense<0.000000e+00> : vector<16x128xf32>
    %19 = tpu.matmul %16, %18, %cst_13 {dimension_numbers = #tpu.dot_dimension_numbers<[1], [0], [0], [1], [0, 0, 1, 1], [], []>} : vector<16x128xf32>, vector<128x128xf32>, vector<16x128xf32> -> vector<16x128xf32>
    %20 = arith.addf %17, %19 : vector<16x128xf32>
    %c0_14 = arith.constant 0 : index
    %c0_15 = arith.constant 0 : index
    %21 = vector.load %arg8[%c0_14, %c0_15] : memref<16x128xf32, #tpu.memory_space<vmem>>, vector<16x128xf32>
    tpu.vector_store %arg8[%c0_14, %c0_15], %20 {strides = array<i32>} : memref<16x128xf32, #tpu.memory_space<vmem>>, vector<16x128xf32>,
    %c0_i32_16 = arith.constant 0 : i32
    %22 = arith.cmpi eq, %arg1, %c0_i32_16 : i32
    %23 = arith.extui %22 : i1 to i32
    %c0_i32_17 = arith.constant 0 : i32
    %24 = arith.cmpi ne, %23, %c0_i32_17 : i32
    scf.if %24 {
      %c0_18 = arith.constant 0 : index
      %c0_19 = arith.constant 0 : index
      %25 = vector.load %arg8[%c0_18, %c0_19] : memref<16x128xf32, #tpu.memory_space<vmem>>, vector<16x128xf32>
      %c0_20 = arith.constant 0 : index
      %c0_21 = arith.constant 0 : index
      %26 = vector.load %arg6[%c0_20, %c0_21] : memref<1x128xf32, #tpu.memory_space<vmem>>, vector<1x128xf32>
      %27 = vector.broadcast %26 : vector<1x128xf32> to vector<16x128xf32>
      %28 = arith.addf %25, %27 : vector<16x128xf32>
      %c0_22 = arith.constant 0 : index
      %c0_23 = arith.constant 0 : index
      %29 = vector.load %arg7[%c0_22, %c0_23] : memref<16x128xf32, #tpu.memory_space<vmem>>, vector<16x128xf32>
      tpu.vector_store %arg7[%c0_22, %c0_23], %28 {strides = array<i32>} : memref<16x128xf32, #tpu.memory_space<vmem>>, vector<16x128xf32>,
    } else {
    }
    return
  }
  func.func @transform_0(%arg0: i32, %arg1: i32) -> (i32, i32) {
    %c0_i32 = arith.constant 0 : i32
    %c0_i32_0 = arith.constant 0 : i32
    return %arg0, %c0_i32 : i32, i32
  }
  func.func @transform_1(%arg0: i32, %arg1: i32) -> (i32, i32) {
    %c0_i32 = arith.constant 0 : i32
    %c0_i32_0 = arith.constant 0 : i32
    return %c0_i32, %arg1 : i32, i32
  }
  func.func @transform_2(%arg0: i32, %arg1: i32) -> (i32, i32) {
    %c0_i32 = arith.constant 0 : i32
    %c0_i32_0 = arith.constant 0 : i32
    return %c0_i32, %arg1 : i32, i32
  }
  func.func @transform_3(%arg0: i32, %arg1: i32) -> (i32, i32) {
    %c0_i32 = arith.constant 0 : i32
    %c0_i32_0 = arith.constant 0 : i32
    return %arg1, %c0_i32 : i32, i32
  }
  func.func @transform_4(%arg0: i32, %arg1: i32) -> (i32, i32) {
    %c0_i32 = arith.constant 0 : i32
    %c0_i32_0 = arith.constant 0 : i32
    %c0_i32_1 = arith.constant 0 : i32
    return %c0_i32, %c0_i32_0 : i32, i32
  }
  func.func @transform_5(%arg0: i32, %arg1: i32) -> (i32, i32) {
    %c0_i32 = arith.constant 0 : i32
    %c0_i32_0 = arith.constant 0 : i32
    return %arg0, %c0_i32 : i32, i32
  }
}

</mosaic_0001>

<bundles_post_ra>
// kernel: tpu_custom_call.1
= control target key start
LH: loop header
LB: loop body
LE: loop exit
PB: predicated region body
PF: predicated region fallthrough
CT: control target
= control target key end

     0   :  { %10 = vsyncpa [#allocation4], 0  ;;  %s579_s0 = inlined_call_operand.hbm [shape: f32[16,128], index: 0, kind: input, shape index: {}]   ;;  %s580_s1 = inlined_call_operand.hbm [shape: f32[128,128], index: 1, kind: input, shape index: {}]   ;;  %s581_s2 = inlined_call_operand.vmem [shape: f32[1,128], index: 2, kind: input, shape index: {}]   ;;  %s582_s3 = inlined_call_operand.hbm [shape: f32[128,128], index: 3, kind: input, shape index: {}]   ;;  %s583_s4 = inlined_call_operand.vmem [shape: f32[1,128], index: 4, kind: input, shape index: {}]   ;;  %s584_s5 = inlined_call_operand.hbm [shape: f32[16,128], index: 5, kind: output, shape index: {}]  }
   0x1   :  { %11 = vsyncpa [#allocation7], 0 }
   0x2   :  { %12 = vsyncpa [#allocation5], 0  ;;  %s513_s18 = smov [#allocation6]   ;;  %s514_s20 = smov [#allocation3]  }
   0x3   :  { %s30_s19 = sshll.u32 %s513_s18, 4  ;;  %s18_s21 = sshll.u32 %s514_s20, 4  ;;  %s31_s19 = int_to_ptr.vmem [resolvable:$true] %s30_s19  ;;  %s19_s21 = int_to_ptr.vmem [resolvable:$true] %s18_s21 }
   0x4   :  { %s435_s22 = scalar_lea.vmem %s31_s19, 2048  ;;  %p440_p1 = scmp.lt.s32.totalorder %s31_s19, %s31_s19 }
   0x5   :  { %p436_p0 = scmp.ne.s32.totalorder %s31_s19, %s435_s22  ;;  %p441_p2 = scmp.lt.s32.totalorder %s435_s22, %s435_s22 }
   0x7   :  { %p442_p3 = por %p441_p2, %p440_p1 }
   0x9   :  { %p443_p4 = pnand %p442_p3, %p436_p0 }
   0xb   :  { %446 = shalt.err (!%p443_p4)
}
   0xc   :  { %s515_s23 = smov 128   ;;  %s516_s24 = smov 8  }
   0xd   :  { %36 = dma.hbm_to_vmem [thread:$0]  %s580_s1, 2048, %s31_s19, [#allocation7], %s515_s23, %s515_s23, %s516_s24  }
   0xe   :  { %s455_s27 = scalar_lea.vmem %s19_s21, 256  ;;  %p460_p6 = scmp.lt.s32.totalorder %s19_s21, %s19_s21 }
   0xf   :  { %p456_p5 = scmp.ne.s32.totalorder %s19_s21, %s455_s27  ;;  %p461_p7 = scmp.lt.s32.totalorder %s455_s27, %s455_s27 }
  0x11   :  { %p462_p8 = por %p461_p7, %p460_p6 }
  0x13   :  { %p463_p9 = pnand %p462_p8, %p456_p5 }
  0x15   :  { %466 = shalt.err (!%p463_p9)
}
  0x16   :  { %24 = dma.hbm_to_vmem [thread:$0]  %s579_s0, 256, %s19_s21, [#allocation4], %s515_s23, %s515_s23, %s516_s24  }
  0x17   :  { %s517_s30 = smov [#allocation8]  }
  0x18   :  { %s44_s6 = sshll.u32 %s517_s30, 4  ;;  %s45_s6 = int_to_ptr.vmem [resolvable:$true] %s44_s6 }
  0x19   :  { %s475_s7 = scalar_lea.vmem %s45_s6, 2048  ;;  %p480_p11 = scmp.lt.s32.totalorder %s45_s6, %s45_s6 }
  0x1a   :  { %p476_p10 = scmp.ne.s32.totalorder %s45_s6, %s475_s7  ;;  %p481_p12 = scmp.lt.s32.totalorder %s475_s7, %s475_s7 }
  0x1c   :  { %p482_p13 = por %p481_p12, %p480_p11 }
  0x1e   :  { %p483_p0 = pnand %p482_p13, %p476_p10 }
  0x20   :  { %486 = shalt.err (!%p483_p0)
}
  0x21   :  { %50 = dma.hbm_to_vmem [thread:$0]  %s582_s3, 2048, %s45_s6, [#allocation7], %s515_s23, %s515_s23, %s516_s24  }
  0x22   :  { %507 = dma.done.wait [#allocation4], 256  }
  0x23   :  { %508 = vsyncadd [#allocation4], 4294967040 }
  0x24   :  { %509 = dma.done.wait [#allocation7], 4096  }
  0x25   :  { %510 = vsyncadd [#allocation7], 4294963200  ;;  %v85_v0 = vld [vmem:[#allocation6 + $0x78] sm:$0xff]  ;;  %v84_v1 = vld [vmem:[#allocation6 + $0x70] sm:$0xff]  ;;  %s518_s10 = smov [#allocation9]  }
  0x26   :  { %347 = vmatprep.subr.mxu0 %v85_v0  ;;  %v83_v2 = vld [vmem:[#allocation6 + $0x68] sm:$0xff]  ;;  %v82_v3 = vld [vmem:[#allocation6 + $0x60] sm:$0xff]  ;;  %v68_v4 = vld [vmem:[#allocation3] sm:$0xff]  ;;  %s296_s11 = sshll.u32 %s518_s10, 4  ;;  %s297_s11 = int_to_ptr.vmem [resolvable:$true] %s296_s11 }
  0x27   :  { %348 = vmatpush3.msra.mxu0 %v85_v0  ;;  %v81_v5 = vld [vmem:[#allocation6 + $0x58] sm:$0xff]  ;;  %379 = vmatprep.mubr.f32.mxu0 %v68_v4  ;;  %v194_v7 = vld [vmem:[#allocation8 + $0x70] sm:$0xff]  ;;  %v193_v9 = vld [vmem:[#allocation8 + $0x68] sm:$0xff]  ;;  %s487_s12 = scalar_lea.vmem %s297_s11, 256  ;;  %p492_p2 = scmp.lt.s32.totalorder %s297_s11, %s297_s11 }
  0x28   :  { %349 = vmatprep.subr.mxu0 %v84_v1  ;;  %v195_v6 = vld [vmem:[#allocation8 + $0x78] sm:$0xff]  ;;  %v80_v8 = vld [vmem:[#allocation6 + $0x50] sm:$0xff]  ;;  %v79_v10 = vld [vmem:[#allocation6 + $0x48] sm:$0xff]  ;;  %p488_p1 = scmp.ne.s32.totalorder %s297_s11, %s487_s12  ;;  %p493_p3 = scmp.lt.s32.totalorder %s487_s12, %s487_s12 }
  0x29   :  { %350 = vmatpush3.msra.mxu0 %v84_v1  ;;  %382 = vmatprep.subr.mxu1 %v195_v6  ;;  %v78_v11 = vld [vmem:[#allocation6 + $0x40] sm:$0xff]  ;;  %v77_v12 = vld [vmem:[#allocation6 + $0x38] sm:$0xff]  ;;  %v76_v13 = vld [vmem:[#allocation6 + $0x30] sm:$0xff] }
  0x2a   :  { %351 = vmatprep.subr.mxu0 %v83_v2  ;;  %383 = vmatpush3.msra.mxu1 %v195_v6  ;;  %v75_v14 = vld [vmem:[#allocation6 + $0x28] sm:$0xff]  ;;  %v74_v15 = vld [vmem:[#allocation6 + $0x20] sm:$0xff]  ;;  %v73_v16 = vld [vmem:[#allocation6 + $0x18] sm:$0xff]  ;;  %p494_p4 = por %p493_p3, %p492_p2 }
  0x2b   :  { %352 = vmatpush3.msra.mxu0 %v83_v2  ;;  %384 = vmatprep.subr.mxu1 %v194_v7  ;;  %v72_v17 = vld [vmem:[#allocation6 + $0x10] sm:$0xff]  ;;  %v71_v18 = vld [vmem:[#allocation6 + $0x8] sm:$0xff]  ;;  %v70_v19 = vld [vmem:[#allocation6] sm:$0xff] }
  0x2c   :  { %353 = vmatprep.subr.mxu0 %v82_v3  ;;  %385 = vmatpush3.msra.mxu1 %v194_v7  ;;  %v69_v20 = vld [vmem:[#allocation3 + $0x8] sm:$0xff]  ;;  %v192_v21 = vld [vmem:[#allocation8 + $0x60] sm:$0xff]  ;;  %v190_v23 = vld [vmem:[#allocation8 + $0x50] sm:$0xff]  ;;  %p495_p5 = pnand %p494_p4, %p488_p1 }
  0x2d   :  { %354 = vmatpush3.msra.mxu0 %v82_v3  ;;  %386 = vmatprep.subr.mxu1 %v193_v9  ;;  %v191_v22 = vld [vmem:[#allocation8 + $0x58] sm:$0xff]  ;;  %v189_v24 = vld [vmem:[#allocation8 + $0x48] sm:$0xff]  ;;  %v188_v25 = vld [vmem:[#allocation8 + $0x40] sm:$0xff] }
  0x2e   :  { %355 = vmatprep.subr.mxu0 %v81_v5  ;;  %387 = vmatpush3.msra.mxu1 %v193_v9  ;;  %v187_v26 = vld [vmem:[#allocation8 + $0x38] sm:$0xff]  ;;  %v186_v27 = vld [vmem:[#allocation8 + $0x30] sm:$0xff]  ;;  %v185_v28 = vld [vmem:[#allocation8 + $0x28] sm:$0xff] }
  0x2f   :  { %356 = vmatpush3.msra.mxu0 %v81_v5  ;;  %388 = vmatprep.subr.mxu1 %v192_v21  ;;  %v184_v29 = vld [vmem:[#allocation8 + $0x20] sm:$0xff]  ;;  %v183_v30 = vld [vmem:[#allocation8 + $0x18] sm:$0xff]  ;;  %v182_v31 = vld [vmem:[#allocation8 + $0x10] sm:$0xff] }
  0x30   :  { %357 = vmatprep.subr.mxu0 %v80_v8  ;;  %389 = vmatpush3.msra.mxu1 %v192_v21  ;;  %v181_v32 = vld [vmem:[#allocation8 + $0x8] sm:$0xff]  ;;  %v180_v33 = vld [vmem:[#allocation8] sm:$0xff]  ;;  %v309_v34 = vld [vmem:[%s581_s2] ss:$0 sm:$0xff] }
  0x31   :  { %358 = vmatpush3.msra.mxu0 %v80_v8  ;;  %390 = vmatprep.subr.mxu1 %v191_v22  ;;  %v310_v49 = vld [vmem:[%s583_s4] ss:$0 sm:$0xff] }
  0x32   :  { %359 = vmatprep.subr.mxu0 %v79_v10  ;;  %391 = vmatpush3.msra.mxu1 %v191_v22 }
  0x33   :  { %360 = vmatpush3.msra.mxu0 %v79_v10  ;;  %392 = vmatprep.subr.mxu1 %v190_v23 }
  0x34   :  { %361 = vmatprep.subr.mxu0 %v78_v11  ;;  %393 = vmatpush3.msra.mxu1 %v190_v23 }
  0x35   :  { %362 = vmatpush3.msra.mxu0 %v78_v11  ;;  %394 = vmatprep.subr.mxu1 %v189_v24 }
  0x36   :  { %363 = vmatprep.subr.mxu0 %v77_v12  ;;  %395 = vmatpush3.msra.mxu1 %v189_v24 }
  0x37   :  { %364 = vmatpush3.msra.mxu0 %v77_v12  ;;  %396 = vmatprep.subr.mxu1 %v188_v25 }
  0x38   :  { %365 = vmatprep.subr.mxu0 %v76_v13  ;;  %397 = vmatpush3.msra.mxu1 %v188_v25 }
  0x39   :  { %366 = vmatpush3.msra.mxu0 %v76_v13  ;;  %398 = vmatprep.subr.mxu1 %v187_v26 }
  0x3a   :  { %367 = vmatprep.subr.mxu0 %v75_v14  ;;  %399 = vmatpush3.msra.mxu1 %v187_v26 }
  0x3b   :  { %368 = vmatpush3.msra.mxu0 %v75_v14  ;;  %400 = vmatprep.subr.mxu1 %v186_v27 }
  0x3c   :  { %369 = vmatprep.subr.mxu0 %v74_v15  ;;  %401 = vmatpush3.msra.mxu1 %v186_v27 }
  0x3d   :  { %370 = vmatpush3.msra.mxu0 %v74_v15  ;;  %402 = vmatprep.subr.mxu1 %v185_v28 }
  0x3e   :  { %371 = vmatprep.subr.mxu0 %v73_v16  ;;  %403 = vmatpush3.msra.mxu1 %v185_v28 }
  0x3f   :  { %372 = vmatpush3.msra.mxu0 %v73_v16  ;;  %404 = vmatprep.subr.mxu1 %v184_v29 }
  0x40   :  { %373 = vmatprep.subr.mxu0 %v72_v17  ;;  %405 = vmatpush3.msra.mxu1 %v184_v29 }
  0x41   :  { %374 = vmatpush3.msra.mxu0 %v72_v17  ;;  %406 = vmatprep.subr.mxu1 %v183_v30 }
  0x42   :  { %375 = vmatprep.subr.mxu0 %v71_v18  ;;  %407 = vmatpush3.msra.mxu1 %v183_v30 }
  0x43   :  { %376 = vmatpush3.msra.mxu0 %v71_v18  ;;  %408 = vmatprep.subr.mxu1 %v182_v31 }
  0x44   :  { %377 = vmatprep.subr.mxu0 %v70_v19  ;;  %409 = vmatpush3.msra.mxu1 %v182_v31 }
  0x45   :  { %378 = vmatpush3.msra.mxu0 %v70_v19  ;;  %410 = vmatprep.subr.mxu1 %v181_v32 }
  0x46   :  { %380 = vmatmul.mubr.f32.vlgmr.msra.gmra.mxu0 %v69_v20  ;;  %411 = vmatpush3.msra.mxu1 %v181_v32 }
  0x47   :  { %412 = vmatprep.subr.mxu1 %v180_v33 }
  0x48   :  { %413 = vmatpush3.msra.mxu1 %v180_v33 }
 0x106   :  { %v381_v35 = vpop.f32.mrf.mxu0 }
 0x107   :  { %v165_v36 = vadd.f32 %v381_v35, %v309_v34 }
 0x108   :  { %v159_v37 = vpop.f32.mrf.mxu0 }
 0x109   :  { %v171_v38 = vmul.f32 0.70710677, %v165_v36  ;;  %v160_v39 = vadd.f32 %v309_v34, %v159_v37  ;;  %v169_v46 = vmul.f32 0.5, %v165_v36 }
 0x10b   :  { %423 = verf.f32 %v171_v38  ;;  %v170_v40 = vmul.f32 0.70710677, %v160_v39  ;;  %v168_v44 = vmul.f32 0.5, %v160_v39 }
 0x10d   :  { %425 = verf.f32 %v170_v40 }
 0x118   :  { %v424_v41 = vpop.eup %423 }
 0x119   :  { %v175_v43 = vadd.f32 1.0, %v424_v41 }
 0x11a   :  { %v426_v42 = vpop.eup %425 }
 0x11b   :  { %v174_v45 = vadd.f32 1.0, %v426_v42  ;;  %v177_v48 = vmul.f32 %v175_v43, %v169_v46 }
 0x11d   :  { %v176_v47 = vmul.f32 %v174_v45, %v168_v44 }
 0x11f   :  { %414 = vmatprep.mubr.f32.mxu1 %v176_v47 }
 0x120   :  { %415 = vmatmul.mubr.f32.vlgmr.msra.gmra.mxu1 %v177_v48 }
 0x1e0   :  { %v416_v50 = vpop.f32.mrf.mxu1 }
 0x1e1   :  { %v288_v51 = vadd.f32 %v416_v50, %v310_v49 }
 0x1e2   :  { %v262_v52 = vpop.f32.mrf.mxu1 }
 0x1e3   :  { %290 = vst [vmem:[#allocation9 + $0x8] sm:$0xff] %v288_v51  ;;  %v287_v53 = vadd.f32 %v310_v49, %v262_v52 }
 0x1e5   :  { %289 = vst [vmem:[#allocation9] sm:$0xff] %v287_v53 }
 0x1e6   :  { %498 = shalt.err (!%p495_p5)
}
 0x1e7   :  { %302 = dma.vmem_to_hbm [thread:$0]  %s297_s11, 256, %s584_s5, [#allocation5], %s515_s23, %s515_s23, %s516_s24  }
 0x1e8   :  { %511 = dma.done.wait [#allocation5], 256  }
 0x1e9   :  { %512 = vsyncadd [#allocation5], 4294967040 }
 0x1ea   :  { %306 = vsyncpa [#allocation4], 1 }
 0x1eb   :  { %307 = vsyncpa [#allocation7], 1 }
 0x1ec   :  { %308 = vsyncpa [#allocation5], 1 }

</bundles_post_ra>
